<compile_context>
chip_gen: v7x
topology: tpu7x:2x2x1
jax: 0.10.0
libtpu: 0.0.40
codegen_flags: <defaults>
</compile_context>

<pallas_src>
import functools

import jax
import jax.numpy as jnp
from jax.experimental import pallas as pl
from jax.experimental.pallas import tpu as pltpu


def _ce_label_smooth_kernel(
    logits_ref, targets_ref, out_ref, *, epsilon, num_classes, batch, block_b
):
    # logits_ref: (block_b, C) native dtype, targets_ref: (block_b, 1) int32,
    # out_ref: (1, 8, 128) f32 per-tile partial block (distinct block per grid
    # step -> safe under a "parallel" batch axis).
    i = pl.program_id(0)

    x = logits_ref[...]                                            # (bb, C) native

    # Row max on the packed native-dtype tile (exact for bf16); upcast after.
    m = jnp.max(x, axis=1, keepdims=True).astype(jnp.float32)      # (bb, 1)
    z = x.astype(jnp.float32) - m                                  # (bb, C) f32

    lse = jnp.log(jnp.sum(jnp.exp(z), axis=1, keepdims=True))      # (bb, 1)

    # Smoothed targets folded into a single weighted lane reduction:
    #   w_c = eps/C + (1-eps)*[c == target],  sum_c w_c == 1
    #   loss_row = -sum_c w_c * (z_c - lse) = lse - sum_c w_c * z_c
    cls_ids = jax.lax.broadcasted_iota(jnp.int32, z.shape, 1)      # (bb, C)
    w = (epsilon / num_classes) + (1.0 - epsilon) * (
        cls_ids == targets_ref[...]
    ).astype(jnp.float32)                                          # (bb, C)
    wz = jnp.sum(z * w, axis=1, keepdims=True)                     # (bb, 1)

    loss_row = lse - wz                                            # (bb, 1)

    # Mask padded rows of a ragged last tile out of the partial sum (must stay
    # a jnp.where so garbage/NaN from out-of-range HBM reads never propagates).
    row_ids = i * block_b + jax.lax.broadcasted_iota(jnp.int32, (block_b, 1), 0)
    loss_row = jnp.where(row_ids < batch, loss_row, 0.0)

    # Per-tile partial, pre-scaled by the compile-time constant 1/B.  Broadcast
    # into a lane-dense (8, 128) block so the store is an unmasked vst; the
    # wrapper only reads element [0, 0] of each tile.
    partial = jnp.sum(loss_row) * (1.0 / batch)
    out_ref[...] = jnp.full((1, 8, 128), partial, dtype=jnp.float32)


def _sublane_pack(itemsize):
    # Rows per sublane tile for the logits dtype: f32 -> 8, bf16 -> 16, 8-bit -> 32.
    return {4: 8, 2: 16, 1: 32}.get(int(itemsize), 8)


def _vmem_capacity_bytes():
    try:
        info = pltpu.get_tpu_info()
        return int(getattr(info, "vmem_capacity_bytes", 128 * 1024 * 1024))
    except Exception:
        return 128 * 1024 * 1024


def _pick_block_b(batch, num_classes, itemsize, vmem_cap_bytes):
    pack = _sublane_pack(itemsize)
    # Big tiles amortize the ~0.35us per-grid-step overhead on this
    # HBM-read-bound kernel.  v7x (64 MiB VMEM/TC) gets a smaller per-buffer
    # budget than v5e/v6e (128 MiB) so 2x double-buffered logits tiles +
    # targets stay comfortably inside VMEM.
    if vmem_cap_bytes <= 96 * 1024 * 1024:      # v7x-class
        budget_bytes = 12 * 1024 * 1024
    else:                                       # v5e / v6e
        budget_bytes = 16 * 1024 * 1024
    rows = (budget_bytes // max(1, num_classes * itemsize)) // pack * pack
    rows = max(pack, rows)
    b_ceil = ((batch + pack - 1) // pack) * pack
    return int(min(rows, b_ceil))


def cross_entropy_label_smooth(logits, targets, *, epsilon=0.1, block_b=None):
    """logits: (B, C) float array (any float dtype); targets: (B,) int class ids."""
    b, c = logits.shape
    itemsize = logits.dtype.itemsize
    targets_2d = targets.astype(jnp.int32).reshape(b, 1)

    vmem_cap = _vmem_capacity_bytes()
    if block_b is None:
        block_b = _pick_block_b(b, c, itemsize, vmem_cap)
    block_b = int(block_b)
    num_tiles = int(pl.cdiv(b, block_b))

    # Scoped VMEM sized to 2x double-buffered inputs + slack (the v5e scoped
    # default of 16 MiB would otherwise cap the big-tile win), but never more
    # than ~3/4 of physical VMEM (matters on v7x's 64 MiB).
    tile_bytes = block_b * c * itemsize
    tgt_bytes = block_b * 4
    needed = 2 * (tile_bytes + tgt_bytes) + (4 << 20)
    vmem_limit = int(min(max(needed, 32 << 20), (vmem_cap * 3) // 4))

    kernel = functools.partial(
        _ce_label_smooth_kernel,
        epsilon=float(epsilon),
        num_classes=int(c),
        batch=int(b),
        block_b=block_b,
    )

    out = pl.pallas_call(
        kernel,
        out_shape=jax.ShapeDtypeStruct((num_tiles, 8, 128), jnp.float32),
        grid_spec=pltpu.PrefetchScalarGridSpec(
            num_scalar_prefetch=0,
            grid=(num_tiles,),
            in_specs=[
                pl.BlockSpec((block_b, c), lambda i: (i, 0)),
                pl.BlockSpec((block_b, 1), lambda i: (i, 0)),
            ],
            # Distinct per-tile output block -> no cross-tile dependence, so the
            # batch axis can be sharded across TensorCores on v7x.
            out_specs=pl.BlockSpec((1, 8, 128), lambda i: (i, 0, 0)),
        ),
        compiler_params=pltpu.CompilerParams(
            dimension_semantics=("parallel",),
            vmem_limit_bytes=vmem_limit,
        ),
        cost_estimate=pl.CostEstimate(
            flops=5 * b * c,
            transcendentals=b * c + b,
            bytes_accessed=b * c * itemsize + b * 4 + num_tiles * 8 * 128 * 4,
        ),
    )(logits, targets_2d)

    # Tiny wrapper-side reduce over num_tiles partial scalars.
    return jnp.sum(out[:, 0, 0])


def _reference(logits, targets, epsilon=0.1):
    # Pure-JAX reference mirroring the PyTorch forward exactly.
    b, c = logits.shape
    log_probs = jax.nn.log_softmax(logits.astype(jnp.float32), axis=1)
    one_hot = jax.nn.one_hot(targets, c, dtype=jnp.float32)
    smoothed = (1.0 - epsilon) * one_hot + epsilon / c
    return jnp.sum(jnp.mean(-smoothed * log_probs, axis=0))


if __name__ == "__main__":
    key = jax.random.PRNGKey(0)

    # Test 1: small, single tile (matches the module's classification use).
    k1, k2, key = jax.random.split(key, 3)
    batch, num_classes = 8, 16
    logits = jax.random.normal(k1, (batch, num_classes), dtype=jnp.float32)
    targets = jax.random.randint(k2, (batch,), 0, num_classes, dtype=jnp.int32)
    loss = jax.block_until_ready(cross_entropy_label_smooth(logits, targets, epsilon=0.1))
    ref = _reference(logits, targets, epsilon=0.1)
    assert jnp.allclose(loss, ref, rtol=1e-5, atol=1e-5), (loss, ref)

    # Test 2: multiple batch tiles with a ragged last tile (forces the
    # per-tile-partial + row-masking path: grid = 3, last tile has 4 valid rows).
    k1, k2, key = jax.random.split(key, 3)
    batch, num_classes = 20, 40
    logits = jax.random.normal(k1, (batch, num_classes), dtype=jnp.float32)
    targets = jax.random.randint(k2, (batch,), 0, num_classes, dtype=jnp.int32)
    loss = jax.block_until_ready(
        cross_entropy_label_smooth(logits, targets, epsilon=0.1, block_b=8)
    )
    ref = _reference(logits, targets, epsilon=0.1)
    assert jnp.allclose(loss, ref, rtol=1e-4, atol=1e-5), (loss, ref)

    # Test 3: bf16 logits stay bf16 on the HBM side; row max on the packed bf16
    # tile, upcast to f32 for the exp / weighted-sum path.
    k1, k2, key = jax.random.split(key, 3)
    batch, num_classes = 16, 256
    logits = jax.random.normal(k1, (batch, num_classes), dtype=jnp.bfloat16)
    targets = jax.random.randint(k2, (batch,), 0, num_classes, dtype=jnp.int32)
    loss = jax.block_until_ready(cross_entropy_label_smooth(logits, targets, epsilon=0.1))
    ref = _reference(logits, targets, epsilon=0.1)
    assert jnp.allclose(loss, ref, rtol=1e-4, atol=1e-5), (loss, ref)

    # Test 4: bf16 multi-tile with 16-row (bf16 sublane-packed) blocks and a
    # ragged last tile (grid = 2, last tile has 8 valid rows).
    k1, k2, key = jax.random.split(key, 3)
    batch, num_classes = 24, 64
    logits = jax.random.normal(k1, (batch, num_classes), dtype=jnp.bfloat16)
    targets = jax.random.randint(k2, (batch,), 0, num_classes, dtype=jnp.int32)
    loss = jax.block_until_ready(
        cross_entropy_label_smooth(logits, targets, epsilon=0.1, block_b=16)
    )
    ref = _reference(logits, targets, epsilon=0.1)
    assert jnp.allclose(loss, ref, rtol=1e-4, atol=1e-5), (loss, ref)

    print("KERNEL_OK")
</pallas_src>

<mosaic_0001>
module attributes {stable_mosaic.version = 11 : i64} {
  func.func @_ce_label_smooth_kernel(%arg0: i32, %arg1: memref<8x16xf32, #tpu.memory_space<vmem>>, %arg2: memref<8x1xi32, #tpu.memory_space<vmem>>, %arg3: memref<1x8x128xf32, #tpu.memory_space<vmem>>) attributes {dimension_semantics = [#tpu.dimension_semantics<parallel>], iteration_bounds = array<i64: 1>, scalar_prefetch = 0 : i64, scratch_operands = 0 : i64, tpu.core_type = #tpu.core_type<tc>, window_params = [{transform_indices = @transform_0, window_bounds = array<i64: 8, 16>}, {transform_indices = @transform_1, window_bounds = array<i64: 8, 1>}, {transform_indices = @transform_2, window_bounds = array<i64: 1, 8, 128>}]} {
    %c0 = arith.constant 0 : index
    %c0_0 = arith.constant 0 : index
    %0 = vector.load %arg1[%c0, %c0_0] : memref<8x16xf32, #tpu.memory_space<vmem>>, vector<8x16xf32>
    %cst = arith.constant dense<0xFF800000> : vector<8xf32>
    %1 = vector.multi_reduction <maximumf>, %0, %cst [1] : vector<8x16xf32> to vector<8xf32>
    %2 = vector.shape_cast %1 : vector<8xf32> to vector<8x1xf32>
    %3 = vector.broadcast %2 : vector<8x1xf32> to vector<8x16xf32>
    %4 = arith.subf %0, %3 : vector<8x16xf32>
    %5 = math.exp %4 : vector<8x16xf32>
    %cst_1 = arith.constant dense<0.000000e+00> : vector<8xf32>
    %6 = vector.multi_reduction <add>, %5, %cst_1 [1] : vector<8x16xf32> to vector<8xf32>
    %7 = vector.shape_cast %6 : vector<8xf32> to vector<8x1xf32>
    %8 = math.log %7 : vector<8x1xf32>
    %9 = tpu.iota {dimensions = array<i32: 1>} : vector<8x16xi32>
    %c0_2 = arith.constant 0 : index
    %c0_3 = arith.constant 0 : index
    %10 = vector.load %arg2[%c0_2, %c0_3] : memref<8x1xi32, #tpu.memory_space<vmem>>, vector<8x1xi32>
    %11 = vector.broadcast %10 : vector<8x1xi32> to vector<8x16xi32>
    %12 = arith.cmpi eq, %9, %11 : vector<8x16xi32>
    %13 = arith.extui %12 : vector<8x16xi1> to vector<8x16xi32>
    %14 = arith.sitofp %13 : vector<8x16xi32> to vector<8x16xf32>
    %cst_4 = arith.constant 0.899999976 : f32
    %15 = vector.broadcast %cst_4 : f32 to vector<8x16xf32>
    %16 = arith.mulf %15, %14 : vector<8x16xf32>
    %cst_5 = arith.constant 6.250000e-03 : f32
    %17 = vector.broadcast %cst_5 : f32 to vector<8x16xf32>
    %18 = arith.addf %17, %16 : vector<8x16xf32>
    %19 = arith.mulf %4, %18 : vector<8x16xf32>
    %cst_6 = arith.constant dense<0.000000e+00> : vector<8xf32>
    %20 = vector.multi_reduction <add>, %19, %cst_6 [1] : vector<8x16xf32> to vector<8xf32>
    %21 = vector.shape_cast %20 : vector<8xf32> to vector<8x1xf32>
    %22 = arith.subf %8, %21 : vector<8x1xf32>
    %c8_i32 = arith.constant 8 : i32
    %23 = arith.muli %arg0, %c8_i32 : i32
    %24 = tpu.iota {dimensions = array<i32: 0>} : vector<8x1xi32>
    %25 = vector.broadcast %23 : i32 to vector<8x1xi32>
    %26 = arith.addi %25, %24 : vector<8x1xi32>
    %c8_i32_7 = arith.constant 8 : i32
    %27 = vector.broadcast %c8_i32_7 : i32 to vector<8x1xi32>
    %28 = arith.cmpi slt, %26, %27 : vector<8x1xi32>
    %cst_8 = arith.constant 0.000000e+00 : f32
    %29 = vector.broadcast %cst_8 : f32 to vector<8x1xf32>
    %30 = arith.select %28, %22, %29 : vector<8x1xi1>, vector<8x1xf32>
    %31 = vector.shape_cast %30 : vector<8x1xf32> to vector<1x8x1xf32>
    %cst_9 = arith.constant dense<0.000000e+00> : vector<1xf32>
    %32 = vector.multi_reduction <add>, %31, %cst_9 [1, 2] : vector<1x8x1xf32> to vector<1xf32>
    %33 = vector.shape_cast %32 : vector<1xf32> to vector<1x1x1xf32>
    %34 = vector.extract %33[0, 0, 0] : f32 from vector<1x1x1xf32>
    %cst_10 = arith.constant 1.250000e-01 : f32
    %35 = arith.mulf %34, %cst_10 : f32
    %36 = vector.broadcast %35 : f32 to vector<1x8x128xf32>
    %c0_11 = arith.constant 0 : index
    %c0_12 = arith.constant 0 : index
    %c0_13 = arith.constant 0 : index
    %37 = vector.load %arg3[%c0_11, %c0_12, %c0_13] : memref<1x8x128xf32, #tpu.memory_space<vmem>>, vector<1x8x128xf32>
    tpu.vector_store %arg3[%c0_11, %c0_12, %c0_13], %36 {strides = array<i32>} : memref<1x8x128xf32, #tpu.memory_space<vmem>>, vector<1x8x128xf32>,
    return
  }
  func.func @transform_0(%arg0: i32) -> (i32, i32) {
    %c0_i32 = arith.constant 0 : i32
    %c0_i32_0 = arith.constant 0 : i32
    return %arg0, %c0_i32 : i32, i32
  }
  func.func @transform_1(%arg0: i32) -> (i32, i32) {
    %c0_i32 = arith.constant 0 : i32
    %c0_i32_0 = arith.constant 0 : i32
    return %arg0, %c0_i32 : i32, i32
  }
  func.func @transform_2(%arg0: i32) -> (i32, i32, i32) {
    %c0_i32 = arith.constant 0 : i32
    %c0_i32_0 = arith.constant 0 : i32
    %c0_i32_1 = arith.constant 0 : i32
    return %arg0, %c0_i32, %c0_i32_0 : i32, i32, i32
  }
}

</mosaic_0001>

<bundles_post_ra>
// kernel: tpu_custom_call.1
= control target key start
LH: loop header
LB: loop body
LE: loop exit
PB: predicated region body
PF: predicated region fallthrough
CT: control target
= control target key end

     0   :  { %vm13_vm0 = vcmask 130048   ;;  %s150_s0 = inlined_call_operand.vmem [shape: f32[8,16], index: 0, kind: input, shape index: {}]   ;;  %s151_s1 = inlined_call_operand.vmem [shape: s32[8,1], index: 1, kind: input, shape index: {}]   ;;  %s152_s2 = inlined_call_operand.hbm [shape: f32[1,8,128], index: 2, kind: output, shape index: {}]  }
   0x1   :  { %v12_v0 = vld [vmem:[%s150_s0] sm:$0xff] }
   0x2   :  { %7 = vsyncpa [#allocation3], 0  ;;  %v14_v1 = vsel %vm13_vm0, %v12_v0, -inf  ;;  %v111_v2 = vmov 0   ;;  %v27_v3 = vld [vmem:[%s151_s1] sm:$0xff]  ;;  %v25_v6 = vlaneseq  ;;  %v112_v10 = vmov 0.0  }
   0x3   :  { %82 = vset.pattern.permute.xlu0 %v111_v2  ;;  %vm48_vm2 = vcmask 7168   ;;  %s113_s0 = smov [#allocation2]  }
   0x4   :  { %15 = vmax.xlane.f32.xlu0 %v14_v1  ;;  %v26_v8 = vand.u32 127, %v25_v6  ;;  %s68_s1 = sshll.u32 %s113_s0, 4  ;;  %s69_s1 = int_to_ptr.vmem [resolvable:$true] %s68_s1 }
   0x5   :  { %s87_s15 = scalar_lea.vmem %s69_s1, 128  ;;  %p92_p1 = scmp.lt.s32.totalorder %s69_s1, %s69_s1 }
   0x6   :  { %p88_p0 = scmp.ne.s32.totalorder %s69_s1, %s87_s15  ;;  %p93_p2 = scmp.lt.s32.totalorder %s87_s15, %s87_s15 }
   0x8   :  { %p94_p3 = por %p93_p2, %p92_p1 }
   0xa   :  { %p95_p4 = pnand %p94_p3, %p88_p0 }
  0x1a   :  { %29 = vperm.xlu0 %82, %v27_v3  }
  0x91   :  { %v16_v4 = vpop.xlane.xlu0 %15 }
  0x92   :  { %v17_v5 = vsub.f32 %v12_v0, %v16_v4 }
  0x94   :  { %v18_v7 = vmul.f32 1.442695, %v17_v5 }
  0x96   :  { %83 = vpow2.f32 %v18_v7 }
  0x99   :  { %v30_v9 = vpop.permute.xlu0 %29 }
  0x9a   :  { %vm31_vm1 = vcmp.eq.s32.totalorder %v26_v8, %v30_v9 }
  0x9b   :  { %v76_v11 = vsel %vm31_vm1, 1.0, %v112_v10 }
  0x9c   :  { %v34_v12 = vmul.f32 0.9, %v76_v11 }
  0x9e   :  { %v35_v13 = vadd.f32 0.00625, %v34_v12 }
  0xa0   :  { %v84_v14 = vpop.eup %83  ;;  %v36_v16 = vmul.f32 %v35_v13, %v17_v5 }
  0xa1   :  { %v20_v15 = vsel %vm13_vm0, %v84_v14, 0.0 }
  0xa2   :  { %21 = vadd.xlane.f32.xlu1 %v20_v15  ;;  %v37_v17 = vsel %vm13_vm0, %v36_v16, 0.0 }
  0xa6   :  { %38 = vadd.xlane.f32.xlu1 %v37_v17 }
 0x12f   :  { %v22_v18 = vpop.xlane.xlu1 %21 }
 0x130   :  { %85 = vlog2.f32 %v22_v18 }
 0x133   :  { %v39_v21 = vpop.xlane.xlu1 %38 }
 0x13a   :  { %v86_v19 = vpop.eup %85 }
 0x13b   :  { %v24_v20 = vmul.f32 0.6931472, %v86_v19 }
 0x13d   :  { %v40_v22 = vsub.f32 %v24_v20, %v39_v21 }
 0x13f   :  { %v49_v23 = vsel %vm48_vm2, %v40_v22, 0.0 }
 0x140   :  { %50 = vadd.xlane.f32.xlu1 %v49_v23 }
 0x1cd   :  { %v51_v24 = vpop.xlane.xlu1 %50 }
 0x1ce   :  { %v52_v25 = vrot.slane %v51_v24, 4 }
 0x1d0   :  { %v53_v26 = vadd.f32 %v52_v25, %v51_v24 }
 0x1d2   :  { %v54_v27 = vrot.slane %v53_v26, 2 }
 0x1d4   :  { %v55_v28 = vadd.f32 %v54_v27, %v53_v26 }
 0x1d6   :  { %v56_v29 = vrot.slane %v55_v28, 1 }
 0x1d8   :  { %v57_v30 = vadd.f32 %v56_v29, %v55_v28 }
 0x1da   :  { %77 = vpush %v57_v30 }
 0x20b   :  { %s78_s13 = spop %77 }
 0x20c   :  { %s59_s14 = smul.f32 0.125, %s78_s13 }
 0x20e   :  { %v60_v31 = vstv %s59_s14 }
 0x20f   :  { %61 = vst [vmem:[#allocation2] sm:$0xff] %v60_v31 }
 0x210   :  { %98 = shalt.err (!%p95_p4)
}
 0x211   :  { %s99_s18 = scalar_lea.hbm %s152_s2, 128 }
 0x212   :  { %p100_p5 = scmp.ne.s32.totalorder %s152_s2, %s99_s18  ;;  %p103_p6 = scmp.lt.u32.totalorder %s99_s18, %s152_s2 }
 0x214   :  { %p105_p7 = pnand %p103_p6, %p100_p5 }
 0x216   :  { %108 = shalt.err (!%p105_p7)
}
 0x217   :  { %71 = dma.vmem_to_hbm [thread:$0]  %s69_s1, 128, %s152_s2, [#allocation3]  }
 0x218   :  { %109 = dma.done.wait [#allocation3], 128  }
 0x219   :  { %110 = vsyncadd [#allocation3], 4294967168 }
 0x21a   :  { %75 = vsyncpa [#allocation3], 1 }

</bundles_post_ra>
